<compile_context>
chip_gen: v6e
topology: v6e:2x2x1
jax: 0.10.0
libtpu: 0.0.40
codegen_flags: <defaults>
</compile_context>

<pallas_src>
import jax
import jax.numpy as jnp
import numpy as np
from jax.experimental import pallas as pl
from jax.experimental.pallas import tpu as pltpu


def meso_kernel(x_ref, bid_ref,
                w1_ref, b1_ref, w2_ref, b2_ref,
                w3_ref, b3_ref, wl_ref, bl_ref,
                z_ref, pool_ref):
    xt = x_ref[...]                                            # (F, TILE_M)

    # first_h: Linear->BN(eval, folded)->ReLU, twice.  Feature-major: y = W^T x + b^T.
    h = jnp.dot(w1_ref[...], xt, preferred_element_type=jnp.float32) + b1_ref[...]
    h = jnp.maximum(h, 0.0)                                    # (H, TILE_M)
    h = jnp.dot(w2_ref[...], h, preferred_element_type=jnp.float32) + b2_ref[...]
    h = jnp.maximum(h, 0.0)

    # linears[0]; dropout(p=0.0) is identity; single layer so Z == z.
    z = jnp.dot(w3_ref[...], h, preferred_element_type=jnp.float32) + b3_ref[...]

    # self.last = Sequential(ReLU(), Linear(dim_target, 2))  (dim_target > 2)
    zz = jnp.maximum(z, 0.0)
    zz = jnp.dot(wl_ref[...], zz, preferred_element_type=jnp.float32) + bl_ref[...]
    z_ref[...] = zz                                            # (2, TILE_M) lane-dense

    # global_max_pool, per-tile partial: membership mask (G, TILE_M) built from
    # the per-node graph ids; padded nodes carry id -1 and never match.
    num_graphs = pool_ref.shape[1]
    bid = bid_ref[...]                                         # (1, TILE_M) int32
    gids = jax.lax.broadcasted_iota(jnp.int32, (num_graphs, bid.shape[1]), 0)
    mask = bid == gids                                         # (G, TILE_M)
    neg_inf = jnp.float32(-jnp.inf)

    # Only 2 output channels -> tiny static loop; each is one cross-lane reduce
    # on the otherwise-idle XLU.
    parts = [
        jnp.max(jnp.where(mask, zz[c:c + 1, :], neg_inf), axis=1, keepdims=True)
        for c in range(2)
    ]                                                          # 2 x (G, 1)
    pool_ref[...] = jnp.concatenate(parts, axis=1)[None]       # (1, G, 2)


def meso_branched_forward(xfeat, batch, num_graphs, params, tile_m=1024):
    """Returns (out, Z) like MesoBranched.forward in the non-explaining path."""
    N, F = xfeat.shape
    assert tile_m % 128 == 0, "tile_m must be a multiple of 128 (lane alignment)"
    n_tiles = pl.cdiv(N, tile_m)
    n_pad = n_tiles * tile_m

    # Feature-major layout; pad rows with zero features and graph id -1.
    x_t = jnp.zeros((F, n_pad), jnp.float32).at[:, :N].set(
        xfeat.astype(jnp.float32).T)
    bid_t = jnp.full((1, n_pad), -1, jnp.int32).at[0, :N].set(
        batch.astype(jnp.int32))

    # Fold eval-mode BatchNorm into the Linear weights (w' = w*s, b' = b*s + t),
    # then transpose everything for the feature-major kernel.
    w1t = (params["w1"] * params["s1"]).T                      # (H, F)
    b1t = (params["b1"] * params["s1"] + params["t1"]).T       # (H, 1)
    w2t = (params["w2"] * params["s2"]).T                      # (H, H)
    b2t = (params["b2"] * params["s2"] + params["t2"]).T       # (H, 1)
    w3t, b3t = params["w3"].T, params["b3"].T                  # (T, H), (T, 1)
    wlt, blt = params["wl"].T, params["bl"].T                  # (2, T), (2, 1)

    H = w1t.shape[0]
    T = w3t.shape[0]

    def resident(arr):
        # Full-extent block, constant index -> stays in VMEM across all tiles.
        return pl.BlockSpec(arr.shape, lambda i: (0,) * arr.ndim)

    in_specs = [
        pl.BlockSpec((F, tile_m), lambda i: (0, i)),   # x column tile (lane-dense)
        pl.BlockSpec((1, tile_m), lambda i: (0, i)),   # graph ids (lane-dense)
        resident(w1t), resident(b1t),
        resident(w2t), resident(b2t),
        resident(w3t), resident(b3t),
        resident(wlt), resident(blt),
    ]
    out_specs = (
        pl.BlockSpec((2, tile_m), lambda i: (0, i)),           # Z tile (lane-dense)
        pl.BlockSpec((1, num_graphs, 2), lambda i: (i, 0, 0)),  # per-tile pool partial
    )
    out_shape = (
        jax.ShapeDtypeStruct((2, n_pad), jnp.float32),
        jax.ShapeDtypeStruct((n_tiles, num_graphs, 2), jnp.float32),
    )

    flops = 2 * n_pad * (F * H + H * H + H * T + T * 2)
    bytes_accessed = 4 * (
        n_pad * F + n_pad + 2 * n_pad + n_tiles * num_graphs * 2
        + H * F + H + H * H + H + T * H + T + 2 * T + 2
    )

    z_t, partials = pl.pallas_call(
        meso_kernel,
        grid=(n_tiles,),
        in_specs=in_specs,
        out_specs=out_specs,
        out_shape=out_shape,
        compiler_params=pltpu.CompilerParams(
            # No cross-iteration state -> node-tile axis is fully parallel.
            dimension_semantics=("parallel",),
        ),
        cost_estimate=pl.CostEstimate(
            flops=flops, transcendentals=0, bytes_accessed=bytes_accessed),
    )(x_t, bid_t, w1t, b1t, w2t, b2t, w3t, b3t, wlt, blt)

    out = jnp.max(partials, axis=0)   # (num_graphs, 2): reduce per-tile partials
    Z = z_t[:, :N].T                  # (N, 2): drop padded columns, back to node-major
    return out, Z


def fold_bn(gamma, beta, mean, var, eps=1e-5):
    scale = gamma / jnp.sqrt(var + eps)
    shift = beta - mean * scale
    return scale, shift


def make_params(key, dim_features, hidden, dim_target):
    ks = jax.random.split(key, 16)

    def rnd(k, shape, scale=0.1):
        return scale * jax.random.normal(k, shape, dtype=jnp.float32)

    # first_h Linear 1 + BatchNorm1d (eval-mode running stats)
    w1 = rnd(ks[0], (dim_features, hidden))
    b1 = rnd(ks[1], (1, hidden))
    g1 = 1.0 + rnd(ks[2], (1, hidden))
    be1 = rnd(ks[3], (1, hidden))
    m1 = rnd(ks[4], (1, hidden))
    v1 = 1.0 + 0.1 * jnp.abs(jax.random.normal(ks[5], (1, hidden), dtype=jnp.float32))
    s1, t1 = fold_bn(g1, be1, m1, v1)

    # first_h Linear 2 + BatchNorm1d
    w2 = rnd(ks[6], (hidden, hidden))
    b2 = rnd(ks[7], (1, hidden))
    g2 = 1.0 + rnd(ks[8], (1, hidden))
    be2 = rnd(ks[9], (1, hidden))
    m2 = rnd(ks[10], (1, hidden))
    v2 = 1.0 + 0.1 * jnp.abs(jax.random.normal(ks[11], (1, hidden), dtype=jnp.float32))
    s2, t2 = fold_bn(g2, be2, m2, v2)

    # linears[0]: Linear(hidden, dim_target)
    w3 = rnd(ks[12], (hidden, dim_target))
    b3 = rnd(ks[13], (1, dim_target))

    # last: Linear(dim_target, 2)
    wl = rnd(ks[14], (dim_target, 2))
    bl = rnd(ks[15], (1, 2))

    return dict(w1=w1, b1=b1, s1=s1, t1=t1,
                w2=w2, b2=b2, s2=s2, t2=t2,
                w3=w3, b3=b3, wl=wl, bl=bl)


def reference_forward(xfeat, batch, num_graphs, p):
    # Pure-JAX reference with unfolded BN (checks the host-side folding too).
    h = xfeat @ p["w1"] + p["b1"]
    h = jnp.maximum(h * p["s1"] + p["t1"], 0.0)
    h = h @ p["w2"] + p["b2"]
    h = jnp.maximum(h * p["s2"] + p["t2"], 0.0)
    z = h @ p["w3"] + p["b3"]
    zz = jnp.maximum(z, 0.0) @ p["wl"] + p["bl"]
    outs = []
    for g in range(num_graphs):
        sel = (batch == g)[:, None]
        outs.append(jnp.max(jnp.where(sel, zz, -jnp.inf), axis=0, keepdims=True))
    return jnp.concatenate(outs, axis=0), zz


if __name__ == "__main__":
    dim_features = 8
    hidden = 16          # layers=[16]
    dim_target = 4       # > 2 -> self.last = Sequential(ReLU(), Linear(4, 2))
    num_nodes = 300
    num_graphs = 3
    tile_m = 128         # minimum lane-aligned tile so the toy test exercises
                         # multiple tiles, padded rows and graphs straddling
                         # tile boundaries; use 512-2048 at real sizes.

    key = jax.random.PRNGKey(0)
    k_x, k_p = jax.random.split(key)

    xfeat = jax.random.normal(k_x, (num_nodes, dim_features), dtype=jnp.float32)
    # Graphs deliberately straddle the 128/256 tile boundaries.
    batch = jnp.concatenate([
        jnp.zeros((100,), dtype=jnp.int32),
        jnp.ones((150,), dtype=jnp.int32),
        jnp.full((50,), 2, dtype=jnp.int32),
    ])
    params = make_params(k_p, dim_features, hidden, dim_target)

    out, Z = meso_branched_forward(xfeat, batch, num_graphs, params, tile_m=tile_m)
    out = jax.block_until_ready(out)
    Z = jax.block_until_ready(Z)

    ref_out, ref_Z = reference_forward(xfeat, batch, num_graphs, params)
    assert out.shape == (num_graphs, 2) and Z.shape == (num_nodes, 2)
    np.testing.assert_allclose(np.asarray(out), np.asarray(ref_out), rtol=1e-4, atol=1e-4)
    np.testing.assert_allclose(np.asarray(Z), np.asarray(ref_Z), rtol=1e-4, atol=1e-4)

    print("KERNEL_OK")
</pallas_src>

<mosaic_0001>
module attributes {stable_mosaic.version = 11 : i64} {
  func.func @meso_kernel(%arg0: i32, %arg1: memref<8x128xf32, #tpu.memory_space<vmem>>, %arg2: memref<1x128xi32, #tpu.memory_space<vmem>>, %arg3: memref<16x8xf32, #tpu.memory_space<vmem>>, %arg4: memref<16x1xf32, #tpu.memory_space<vmem>>, %arg5: memref<16x16xf32, #tpu.memory_space<vmem>>, %arg6: memref<16x1xf32, #tpu.memory_space<vmem>>, %arg7: memref<4x16xf32, #tpu.memory_space<vmem>>, %arg8: memref<4x1xf32, #tpu.memory_space<vmem>>, %arg9: memref<2x4xf32, #tpu.memory_space<vmem>>, %arg10: memref<2x1xf32, #tpu.memory_space<vmem>>, %arg11: memref<2x128xf32, #tpu.memory_space<vmem>>, %arg12: memref<1x3x2xf32, #tpu.memory_space<vmem>>) attributes {dimension_semantics = [#tpu.dimension_semantics<parallel>], iteration_bounds = array<i64: 3>, scalar_prefetch = 0 : i64, scratch_operands = 0 : i64, tpu.core_type = #tpu.core_type<tc>, window_params = [{transform_indices = @transform_0, window_bounds = array<i64: 8, 128>}, {transform_indices = @transform_1, window_bounds = array<i64: 1, 128>}, {pipeline_mode = #tpu.pipeline_mode<synchronous>, transform_indices = @transform_2, window_bounds = array<i64: 16, 8>}, {pipeline_mode = #tpu.pipeline_mode<synchronous>, transform_indices = @transform_3, window_bounds = array<i64: 16, 1>}, {pipeline_mode = #tpu.pipeline_mode<synchronous>, transform_indices = @transform_4, window_bounds = array<i64: 16, 16>}, {pipeline_mode = #tpu.pipeline_mode<synchronous>, transform_indices = @transform_5, window_bounds = array<i64: 16, 1>}, {pipeline_mode = #tpu.pipeline_mode<synchronous>, transform_indices = @transform_6, window_bounds = array<i64: 4, 16>}, {pipeline_mode = #tpu.pipeline_mode<synchronous>, transform_indices = @transform_7, window_bounds = array<i64: 4, 1>}, {pipeline_mode = #tpu.pipeline_mode<synchronous>, transform_indices = @transform_8, window_bounds = array<i64: 2, 4>}, {pipeline_mode = #tpu.pipeline_mode<synchronous>, transform_indices = @transform_9, window_bounds = array<i64: 2, 1>}, {transform_indices = @transform_10, window_bounds = array<i64: 2, 128>}, {transform_indices = @transform_11, window_bounds = array<i64: 1, 3, 2>}]} {
    %c0 = arith.constant 0 : index
    %c0_0 = arith.constant 0 : index
    %0 = vector.load %arg1[%c0, %c0_0] : memref<8x128xf32, #tpu.memory_space<vmem>>, vector<8x128xf32>
    %c0_1 = arith.constant 0 : index
    %c0_2 = arith.constant 0 : index
    %1 = vector.load %arg3[%c0_1, %c0_2] : memref<16x8xf32, #tpu.memory_space<vmem>>, vector<16x8xf32>
    %cst = arith.constant dense<0.000000e+00> : vector<16x128xf32>
    %2 = tpu.matmul %1, %0, %cst {dimension_numbers = #tpu.dot_dimension_numbers<[1], [0], [0], [1], [0, 0, 1, 1], [], []>} : vector<16x8xf32>, vector<8x128xf32>, vector<16x128xf32> -> vector<16x128xf32>
    %c0_3 = arith.constant 0 : index
    %c0_4 = arith.constant 0 : index
    %3 = vector.load %arg4[%c0_3, %c0_4] : memref<16x1xf32, #tpu.memory_space<vmem>>, vector<16x1xf32>
    %4 = vector.broadcast %3 : vector<16x1xf32> to vector<16x128xf32>
    %5 = arith.addf %2, %4 : vector<16x128xf32>
    %cst_5 = arith.constant 0.000000e+00 : f32
    %6 = vector.broadcast %cst_5 : f32 to vector<16x128xf32>
    %7 = arith.maximumf %5, %6 : vector<16x128xf32>
    %c0_6 = arith.constant 0 : index
    %c0_7 = arith.constant 0 : index
    %8 = vector.load %arg5[%c0_6, %c0_7] : memref<16x16xf32, #tpu.memory_space<vmem>>, vector<16x16xf32>
    %cst_8 = arith.constant dense<0.000000e+00> : vector<16x128xf32>
    %9 = tpu.matmul %8, %7, %cst_8 {dimension_numbers = #tpu.dot_dimension_numbers<[1], [0], [0], [1], [0, 0, 1, 1], [], []>} : vector<16x16xf32>, vector<16x128xf32>, vector<16x128xf32> -> vector<16x128xf32>
    %c0_9 = arith.constant 0 : index
    %c0_10 = arith.constant 0 : index
    %10 = vector.load %arg6[%c0_9, %c0_10] : memref<16x1xf32, #tpu.memory_space<vmem>>, vector<16x1xf32>
    %11 = vector.broadcast %10 : vector<16x1xf32> to vector<16x128xf32>
    %12 = arith.addf %9, %11 : vector<16x128xf32>
    %cst_11 = arith.constant 0.000000e+00 : f32
    %13 = vector.broadcast %cst_11 : f32 to vector<16x128xf32>
    %14 = arith.maximumf %12, %13 : vector<16x128xf32>
    %c0_12 = arith.constant 0 : index
    %c0_13 = arith.constant 0 : index
    %15 = vector.load %arg7[%c0_12, %c0_13] : memref<4x16xf32, #tpu.memory_space<vmem>>, vector<4x16xf32>
    %cst_14 = arith.constant dense<0.000000e+00> : vector<4x128xf32>
    %16 = tpu.matmul %15, %14, %cst_14 {dimension_numbers = #tpu.dot_dimension_numbers<[1], [0], [0], [1], [0, 0, 1, 1], [], []>} : vector<4x16xf32>, vector<16x128xf32>, vector<4x128xf32> -> vector<4x128xf32>
    %c0_15 = arith.constant 0 : index
    %c0_16 = arith.constant 0 : index
    %17 = vector.load %arg8[%c0_15, %c0_16] : memref<4x1xf32, #tpu.memory_space<vmem>>, vector<4x1xf32>
    %18 = vector.broadcast %17 : vector<4x1xf32> to vector<4x128xf32>
    %19 = arith.addf %16, %18 : vector<4x128xf32>
    %cst_17 = arith.constant 0.000000e+00 : f32
    %20 = vector.broadcast %cst_17 : f32 to vector<4x128xf32>
    %21 = arith.maximumf %19, %20 : vector<4x128xf32>
    %c0_18 = arith.constant 0 : index
    %c0_19 = arith.constant 0 : index
    %22 = vector.load %arg9[%c0_18, %c0_19] : memref<2x4xf32, #tpu.memory_space<vmem>>, vector<2x4xf32>
    %cst_20 = arith.constant dense<0.000000e+00> : vector<2x128xf32>
    %23 = tpu.matmul %22, %21, %cst_20 {dimension_numbers = #tpu.dot_dimension_numbers<[1], [0], [0], [1], [0, 0, 1, 1], [], []>} : vector<2x4xf32>, vector<4x128xf32>, vector<2x128xf32> -> vector<2x128xf32>
    %c0_21 = arith.constant 0 : index
    %c0_22 = arith.constant 0 : index
    %24 = vector.load %arg10[%c0_21, %c0_22] : memref<2x1xf32, #tpu.memory_space<vmem>>, vector<2x1xf32>
    %25 = vector.broadcast %24 : vector<2x1xf32> to vector<2x128xf32>
    %26 = arith.addf %23, %25 : vector<2x128xf32>
    %c0_23 = arith.constant 0 : index
    %c0_24 = arith.constant 0 : index
    %27 = vector.load %arg11[%c0_23, %c0_24] : memref<2x128xf32, #tpu.memory_space<vmem>>, vector<2x128xf32>
    tpu.vector_store %arg11[%c0_23, %c0_24], %26 {strides = array<i32>} : memref<2x128xf32, #tpu.memory_space<vmem>>, vector<2x128xf32>,
    %c0_25 = arith.constant 0 : index
    %c0_26 = arith.constant 0 : index
    %28 = vector.load %arg2[%c0_25, %c0_26] : memref<1x128xi32, #tpu.memory_space<vmem>>, vector<1x128xi32>
    %29 = tpu.iota {dimensions = array<i32: 0>} : vector<3x128xi32>
    %30 = vector.broadcast %28 : vector<1x128xi32> to vector<3x128xi32>
    %31 = arith.cmpi eq, %30, %29 : vector<3x128xi32>
    %32 = vector.extract_strided_slice %26 {offsets = [0, 0], sizes = [1, 128], strides = [1, 1]} : vector<2x128xf32> to vector<1x128xf32>
    %cst_27 = arith.constant 0xFF800000 : f32
    %33 = vector.shape_cast %32 : vector<1x128xf32> to vector<1x128xf32>
    %34 = vector.broadcast %33 : vector<1x128xf32> to vector<3x128xf32>
    %35 = vector.broadcast %cst_27 : f32 to vector<3x128xf32>
    %36 = arith.select %31, %34, %35 : vector<3x128xi1>, vector<3x128xf32>
    %cst_28 = arith.constant dense<0xFF800000> : vector<3xf32>
    %37 = vector.multi_reduction <maximumf>, %36, %cst_28 [1] : vector<3x128xf32> to vector<3xf32>
    %38 = vector.shape_cast %37 : vector<3xf32> to vector<3x1xf32>
    %39 = vector.extract_strided_slice %26 {offsets = [1, 0], sizes = [1, 128], strides = [1, 1]} : vector<2x128xf32> to vector<1x128xf32>
    %cst_29 = arith.constant 0xFF800000 : f32
    %40 = vector.shape_cast %39 : vector<1x128xf32> to vector<1x128xf32>
    %41 = vector.broadcast %40 : vector<1x128xf32> to vector<3x128xf32>
    %42 = vector.broadcast %cst_29 : f32 to vector<3x128xf32>
    %43 = arith.select %31, %41, %42 : vector<3x128xi1>, vector<3x128xf32>
    %cst_30 = arith.constant dense<0xFF800000> : vector<3xf32>
    %44 = vector.multi_reduction <maximumf>, %43, %cst_30 [1] : vector<3x128xf32> to vector<3xf32>
    %45 = vector.shape_cast %44 : vector<3xf32> to vector<3x1xf32>
    %46 = tpu.concatenate %38, %45 in 1 : vector<3x1xf32>, vector<3x1xf32> -> vector<3x2xf32>
    %47 = vector.shape_cast %46 : vector<3x2xf32> to vector<1x3x2xf32>
    %c0_31 = arith.constant 0 : index
    %c0_32 = arith.constant 0 : index
    %c0_33 = arith.constant 0 : index
    %48 = vector.load %arg12[%c0_31, %c0_32, %c0_33] : memref<1x3x2xf32, #tpu.memory_space<vmem>>, vector<1x3x2xf32>
    tpu.vector_store %arg12[%c0_31, %c0_32, %c0_33], %47 {strides = array<i32>} : memref<1x3x2xf32, #tpu.memory_space<vmem>>, vector<1x3x2xf32>,
    return
  }
  func.func @transform_0(%arg0: i32) -> (i32, i32) {
    %c0_i32 = arith.constant 0 : i32
    %c0_i32_0 = arith.constant 0 : i32
    return %c0_i32, %arg0 : i32, i32
  }
  func.func @transform_1(%arg0: i32) -> (i32, i32) {
    %c0_i32 = arith.constant 0 : i32
    %c0_i32_0 = arith.constant 0 : i32
    return %c0_i32, %arg0 : i32, i32
  }
  func.func @transform_2(%arg0: i32) -> (i32, i32) {
    %c0_i32 = arith.constant 0 : i32
    %c0_i32_0 = arith.constant 0 : i32
    %c0_i32_1 = arith.constant 0 : i32
    return %c0_i32, %c0_i32_0 : i32, i32
  }
  func.func @transform_3(%arg0: i32) -> (i32, i32) {
    %c0_i32 = arith.constant 0 : i32
    %c0_i32_0 = arith.constant 0 : i32
    %c0_i32_1 = arith.constant 0 : i32
    return %c0_i32, %c0_i32_0 : i32, i32
  }
  func.func @transform_4(%arg0: i32) -> (i32, i32) {
    %c0_i32 = arith.constant 0 : i32
    %c0_i32_0 = arith.constant 0 : i32
    %c0_i32_1 = arith.constant 0 : i32
    return %c0_i32, %c0_i32_0 : i32, i32
  }
  func.func @transform_5(%arg0: i32) -> (i32, i32) {
    %c0_i32 = arith.constant 0 : i32
    %c0_i32_0 = arith.constant 0 : i32
    %c0_i32_1 = arith.constant 0 : i32
    return %c0_i32, %c0_i32_0 : i32, i32
  }
  func.func @transform_6(%arg0: i32) -> (i32, i32) {
    %c0_i32 = arith.constant 0 : i32
    %c0_i32_0 = arith.constant 0 : i32
    %c0_i32_1 = arith.constant 0 : i32
    return %c0_i32, %c0_i32_0 : i32, i32
  }
  func.func @transform_7(%arg0: i32) -> (i32, i32) {
    %c0_i32 = arith.constant 0 : i32
    %c0_i32_0 = arith.constant 0 : i32
    %c0_i32_1 = arith.constant 0 : i32
    return %c0_i32, %c0_i32_0 : i32, i32
  }
  func.func @transform_8(%arg0: i32) -> (i32, i32) {
    %c0_i32 = arith.constant 0 : i32
    %c0_i32_0 = arith.constant 0 : i32
    %c0_i32_1 = arith.constant 0 : i32
    return %c0_i32, %c0_i32_0 : i32, i32
  }
  func.func @transform_9(%arg0: i32) -> (i32, i32) {
    %c0_i32 = arith.constant 0 : i32
    %c0_i32_0 = arith.constant 0 : i32
    %c0_i32_1 = arith.constant 0 : i32
    return %c0_i32, %c0_i32_0 : i32, i32
  }
  func.func @transform_10(%arg0: i32) -> (i32, i32) {
    %c0_i32 = arith.constant 0 : i32
    %c0_i32_0 = arith.constant 0 : i32
    return %c0_i32, %arg0 : i32, i32
  }
  func.func @transform_11(%arg0: i32) -> (i32, i32, i32) {
    %c0_i32 = arith.constant 0 : i32
    %c0_i32_0 = arith.constant 0 : i32
    %c0_i32_1 = arith.constant 0 : i32
    return %arg0, %c0_i32, %c0_i32_0 : i32, i32, i32
  }
}

</mosaic_0001>

<bundles_post_ra>
// kernel: tpu_custom_call.1
= control target key start
LH: loop header
LB: loop body
LE: loop exit
PB: predicated region body
PF: predicated region fallthrough
CT: control target
= control target key end

     0   :  { %s1277_s0 = inlined_call_operand.vmem [shape: f32[8,384], index: 0, kind: input, shape index: {}]   ;;  %s1278_s1 = inlined_call_operand.vmem [shape: s32[1,384], index: 1, kind: input, shape index: {}]   ;;  %s1279_s2 = inlined_call_operand.vmem [shape: f32[16,8], index: 2, kind: input, shape index: {}]   ;;  %s1280_s3 = inlined_call_operand.vmem [shape: f32[16,1], index: 3, kind: input, shape index: {}]   ;;  %s1281_s4 = inlined_call_operand.vmem [shape: f32[16,16], index: 4, kind: input, shape index: {}]   ;;  %s1282_s5 = inlined_call_operand.vmem [shape: f32[16,1], index: 5, kind: input, shape index: {}]   ;;  %s1283_s6 = inlined_call_operand.vmem [shape: f32[4,16], index: 6, kind: input, shape index: {}]   ;;  %s1284_s7 = inlined_call_operand.vmem [shape: f32[4,1], index: 7, kind: input, shape index: {}]   ;;  %s1285_s8 = inlined_call_operand.vmem [shape: f32[2,4], index: 8, kind: input, shape index: {}]   ;;  %s1286_s9 = inlined_call_operand.vmem [shape: f32[2,1], index: 9, kind: input, shape index: {}]   ;;  %s1287_s10 = inlined_call_operand.hbm [shape: f32[2,384], index: 10, kind: output, shape index: {0}]   ;;  %s1288_s11 = inlined_call_operand.vmem [shape: f32[3,3,2], index: 11, kind: output, shape index: {1}]  }
   0x1   :  { %1289 = sst [smem:[#allocation6_spill]] %s1277_s0 }
   0x2   :  { %1290 = sst [smem:[#allocation7_spill]] %s1278_s1 }
   0x3   :  { %17 = vsyncpa [#allocation3], 0 }
   0x4   :  { %19 = vsyncpa [#allocation3 + $0x1], 0  ;;  %s1138_s17 = smov 0   ;;  %s1140_s18 = smov 0  }
   0x5   :  { %s1142_s19 = smov 0   ;;  %s1144_s20 = smov 0  }
   0x6 LB: > { %s1159_s21 = sadd.s32 4294967295, %s1072_s20   ;;  %s913_s22 = sadd.s32 4294967294, %s1072_s20   ;;  %s1072_s20 = sphi %s1144_s20, %s1300_s20   ;;  %s1068_s19 = sphi %s1142_s19, %s1299_s19   ;;  %s1064_s18 = sphi %s1140_s18, %s1298_s18   ;;  %s1060_s17 = sphi %s1138_s17, %s1297_s17  }
   0x7   : > { %s1163_s23 = sadd.s32 1, %s1072_s20   ;;  %s252_s24 = sadd.s32 1, %s1068_s19 }
   0x8   : > { %s249_s25 = ssub.s32 %s1072_s20, %s1163_s23  ;;  %p262_p0 = scmp.ne.s32.totalorder %s1068_s19, %s1064_s18 }
   0x9   : > { %p250_p1 = scmp.eq.s32.totalorder %s249_s25, 0  ;;  %p263_p2 = scmp.eq.s32.totalorder %s1159_s21, 2 }
   0xa   : > { %p268_p3 = scmp.ne.s32.totalorder %s1064_s18, %s1060_s17  ;;  %p269_p4 = scmp.eq.s32.totalorder %s913_s22, 2 }
   0xb   : > { %s1174_s26 = scalar_select %p250_p1, %s1068_s19, %s252_s24  }
   0xc   : > { %p1176_p5 = por %p263_p2, %p262_p0  ;;  %p1180_p6 = por %p269_p4, %p268_p3 }
   0xd   : > { %1291 = sst [smem:[#allocation5_spill]] %s1174_s26  ;;  %p916_p7 = scmp.ge.s32.totalorder %s1072_s20, 1 }
   0xe   : > { %p350_p8 = scmp.lt.s32.totalorder %s1072_s20, 4 }
  0x10   : > { %p351_p9 = pnand %p916_p7, %p350_p8 }
  0x11   : > { %p396_p10 = scmp.lt.s32.totalorder (!%p351_p9), %s1159_s21, 2  ;;  %s1294_s0 = sld [smem:[#allocation6_spill]] (!%p351_p9) }
  0x12   : > { %354 = sbr.rel (%p351_p9) target bundleno = 968 (0x3c8), region = 60  ;;  %s387_s25 = sand.u32 (!%p351_p9), 1, %s1064_s18  }
  0x13   : > { %s1295_s1 = sld [smem:[#allocation7_spill]] (!%p351_p9)  ;;  %s917_s12 = sshll.u32 (!%p351_p9), %s387_s25, 1 }
  0x14   : > { %s389_s13 = scalar_lea.vmem (!%p351_p9), [#allocation2], %s917_s12  ;;  %s929_s15 = sshll.u32 (!%p351_p9), %s1159_s21, 5 }
  0x15   : > { %s816_s24 = scalar_lea.hbm (!%p351_p9), %s1287_s10, %s929_s15  ;;  %s801_s26 = scalar_lea.sflag (!%p351_p9), [#allocation3], %s387_s25 }
  0x16   : > { %s1077_s12 = smov (!%p351_p9), [#allocation2]  }
  0x17   : > { %v408_v0 = vld [vmem:[%s1279_s2] sm:$0xff]  ;;  %vm422_vm0 = vcmask 64512   ;;  %v411_v1 = vld [vmem:[%s1280_s3 + $0x8] sm:$0xff]  ;;  %v1074_v2 = vmov 0   ;;  %s1195_s14 = scalar_select %p396_p10, %s1159_s21, 2  ;;  %vm520_vm1 = vcmask 130048   ;;  %v772_v36 = vlaneseq }
  0x18   : > { %946 = vmatprep.mubr.msk.f32.mxu0 %vm422_vm0, %v408_v0  ;;  %1010 = vset.pattern.permute.xlu0 %v1074_v2  ;;  %v410_v3 = vld [vmem:[%s1280_s3] sm:$0xff]  ;;  %v409_v5 = vld [vmem:[%s1279_s2 + $0x8] sm:$0xff]  ;;  %v1075_v20 = vmov 0.0   ;;  %vm1076_vm2 = vmmov 0   ;;  %vm696_vm3 = vcmask 1043456   ;;  %vm692_vm4 = vcmask 31744  }
  0x19   : > { %419 = vperm.xlu0 %1010, %v411_v1   ;;  %1011 = vset.pattern.permute.xlu1 %v1074_v2  ;;  %s918_s22 = sshll.u32 %s1195_s14, 3  ;;  %v605_v6 = vld [vmem:[%s1284_s7] sm:$0xf]  ;;  %v509_v8 = vld [vmem:[%s1282_s5 + $0x8] sm:$0xff]  ;;  %v773_v37 = vshrl.u32 %v772_v36, 7  ;;  %s402_s30 = scalar_lea.vmem %s1295_s1, %s1195_s14  ;;  %vm784_vm6 = vcmask 1042432  }
  0x1a   : > { %s399_s29 = scalar_lea.vmem %s1294_s0, %s918_s22  ;;  %v506_v7 = vld [vmem:[%s1281_s4] sm:$0xff]  ;;  %517 = vperm.xlu1 %1011, %v509_v8   ;;  %v507_v19 = vld [vmem:[%s1281_s4 + $0x8] sm:$0xff]  ;;  %s1016_s0 = sshll.u32 %s1077_s12, 4  ;;  %s1017_s0 = int_to_ptr.vmem [resolvable:$false] %s1016_s0 }
  0x1b   : > { %v407_v4 = vld [vmem:[%s399_s29] sm:$0xff]  ;;  %953 = vmatprep.mubr.msk.f32.mxu1 %vm520_vm1, %v506_v7  ;;  %v790_v39 = vsub.s32 1, %v773_v37  ;;  %v781_v40 = vsub.s32 0, %v773_v37  ;;  %s818_s29 = sshll.u32 %s389_s13, 4  ;;  %s1018_s1 = scalar_lea.vmem %s1017_s0, 64  ;;  %s819_s29 = int_to_ptr.vmem [resolvable:$true] %s818_s29 }
  0x1c   : > { %944 = vmatprep.subr.mxu0 %v407_v4  ;;  %v508_v9 = vld [vmem:[%s1282_s5] sm:$0xff]  ;;  %p1019_p0 = scmp.lt.s32.totalorder %s819_s29, %s1017_s0 }
  0x1d   : > { %414 = vperm.xlu0 %1010, %v410_v3   ;;  %945 = vmatpush3.msra.mxu0 %v407_v4  ;;  %v686_v10 = vld [vmem:[%s1286_s9] sm:$0x3] }
  0x1e   : > { %947 = vmatmul.mubr.msk.f32.vlgmr.msra.gmra.mxu0 %vm422_vm0, %v409_v5  ;;  %512 = vperm.xlu1 %1011, %v508_v9   ;;  %v604_v29 = vld [vmem:[%s1283_s6] sm:$0xf] }
  0x1f   : > { %956 = vmatprep.subr.mxu0 %v1075_v20  ;;  %960 = vmatprep.mubr.msk.f32.mxu0 %vm1076_vm2, %v1075_v20  ;;  %v685_v35 = vld [vmem:[%s1285_s8] sm:$0x3] }
  0x20   : > { %v927_v38 = vld [vmem:[%s402_s30] ss:$0 sm:$0xff]  ;;  %s1012_s30 = scalar_lea.vmem %s819_s29, 32 }
  0x21   : > { %608 = vperm.xlu0 %1010, %v605_v6   ;;  %vm778_vm5 = vcmp.eq.s32.totalorder %v927_v38, %v773_v37  ;;  %p1013_p11 = scmp.ne.s32.totalorder %s819_s29, %s1012_s30  ;;  %p1020_p1 = scmp.lt.s32.totalorder %s1018_s1, %s1012_s30 }
  0x22   : > { %689 = vperm.xlu1 %1011, %v686_v10  }
  0x23   : > { %p1014_p12 = pnand %p1013_p11, %p1176_p5  ;;  %p1021_p2 = por %p1020_p1, %p1019_p0 }
  0x25   : > { %p1015_p13 = pneg %p1014_p12 }
  0x27   : > { %p1022_p3 = pnand %p1021_p2, %p1015_p13 }
  0x94   : > { %v420_v11 = vpop.permute.xlu0 %419 }
  0x95   : > { %v518_v21 = vpop.permute.xlu1 %517 }
  0x98   : > { %v415_v14 = vpop.permute.xlu0 %414 }
  0x99   : > { %v513_v24 = vpop.permute.xlu1 %512 }
  0x9c   : > { %v609_v30 = vpop.permute.xlu0 %608 }
  0x9d   : > { %v690_v41 = vpop.permute.xlu1 %689 }
  0xde   : > { %v948_v12 = vpop.f32.mrf.mxu0 }
  0xdf   : > { %v501_v13 = vadd.f32 %v948_v12, %v420_v11 }
  0xe0   : > { %v495_v15 = vpop.f32.mrf.mxu0 }
  0xe1   : > { %v505_v16 = vmax.f32 %v501_v13, 0.0  ;;  %v496_v17 = vadd.f32 %v495_v15, %v415_v14 }
  0xe3   : > { %v504_v18 = vmax.f32 %v496_v17, 0.0  ;;  %949 = vmatprep.subr.mxu1 %v505_v16 }
  0xe4   : > { %950 = vmatpush3.msra.mxu1 %v505_v16 }
  0xe5   : > { %951 = vmatprep.subr.mxu1 %v504_v18 }
  0xe6   : > { %952 = vmatpush3.msra.mxu1 %v504_v18 }
  0xe7   : > { %954 = vmatmul.mubr.msk.f32.vlgmr.msra.gmra.mxu1 %vm520_vm1, %v507_v19  ;;  %963 = vmatprep.subr.mxu1 %v1075_v20 }
  0xe8   : > { %965 = vmatprep.mubr.msk.f32.mxu1 %vm1076_vm2, %v1075_v20 }
 0x1a7   : > { %v955_v22 = vpop.f32.mrf.mxu1 }
 0x1a8   : > { %v599_v23 = vadd.f32 %v955_v22, %v518_v21 }
 0x1a9   : > { %v593_v25 = vpop.f32.mrf.mxu1 }
 0x1aa   : > { %v603_v26 = vmax.f32 %v599_v23, 0.0  ;;  %v594_v27 = vadd.f32 %v593_v25, %v513_v24 }
 0x1ac   : > { %v602_v28 = vmax.f32 %v594_v27, 0.0  ;;  %957 = vmatpush3.msra.mxu0 %v603_v26 }
 0x1ad   : > { %958 = vmatprep.subr.mxu0 %v1075_v20 }
 0x1ae   : > { %959 = vmatpush3.msra.mxu0 %v602_v28 }
 0x1af   : > { %961 = vmatmul.mubr.msk.f32.vlgmr.msra.gmra.mxu0 %vm520_vm1, %v604_v29 }
 0x26f   : > { %v680_v31 = vpop.f32.mrf.mxu0 }
 0x270   : > { %v681_v32 = vadd.f32 %v680_v31, %v609_v30 }
 0x271   : > { %v962_v33 = vpop.f32.mrf.mxu0 }
 0x272   : > { %v684_v34 = vmax.f32 %v681_v32, 0.0 }
 0x274   : > { %964 = vmatpush3.msk.msra.mxu1 %vm696_vm3, %v684_v34 }
 0x275   : > { %966 = vmatmul.mubr.msk.f32.vlgmr.msra.gmra.mxu1 %vm692_vm4, %v685_v35 }
 0x335   : > { %v766_v42 = vpop.f32.mrf.mxu1 }
 0x336   : > { %v767_v43 = vadd.f32 %v766_v42, %v690_v41 }
 0x337   : > { %v967_v44 = vpop.f32.mrf.mxu1 }
 0x338   : > { %v791_v45 = vrot.slane %v767_v43, %v790_v39  ;;  %v782_v46 = vrot.slane %v767_v43, %v781_v40  ;;  %770 = vst [vmem:[%s389_s13] sm:$0x3] %v767_v43 }
 0x33a   : > { %v792_v47 = vsel %vm778_vm5, %v791_v45, -inf  ;;  %v783_v48 = vsel %vm778_vm5, %v782_v46, -inf }
 0x33b   : > { %v793_v49 = vsel %vm784_vm6, %v792_v47, -inf  ;;  %v785_v50 = vsel %vm784_vm6, %v783_v48, -inf }
 0x33c   : > { %794 = vmax.xlane.f32.xlu1 %v793_v49  ;;  %786 = vmax.xlane.f32.xlu0 %v785_v50 }
 0x33d   : > { %1025 = shalt.err (!%p1022_p3)
}
 0x33e   : > { %s1026_s21 = scalar_lea.hbm %s816_s24, 32  ;;  %s1030_s15 = scalar_lea.hbm %s1287_s10, 96 }
 0x33f   : > { %p1027_p4 = scmp.ne.s32.totalorder %s816_s24, %s1026_s21  ;;  %p1031_p9 = scmp.lt.s32.totalorder %s816_s24, %s1287_s10 }
 0x340   : > { %p1032_p10 = scmp.lt.s32.totalorder %s1030_s15, %s1026_s21 }
 0x341   : > { %p1028_p7 = pnand %p1027_p4, %p1176_p5 }
 0x342   : > { %p1033_p11 = por %p1032_p10, %p1031_p9 }
 0x343   : > { %p1029_p8 = pneg %p1028_p7 }
 0x345   : > { %p1034_p12 = pnand %p1033_p11, %p1029_p8 }
 0x347   : > { %1037 = shalt.err (!%p1034_p12)
}
 0x348   : > { %968 = dma.vmem_to_hbm [thread:$0]  (%p1176_p5), %s819_s29, 32, %s816_s24, %s801_s26   ;;  %vm796_vm7 = vcmask 7168   ;;  %vm798_vm8 = vcmask 10240  }
 0x349   : > { %s919_s0 = sshll.u32 %s1195_s14, 2 }
 0x34a   : > { %s406_s12 = scalar_lea.vmem %s1288_s11, %s919_s0 }
 0x3c5   : > { %v795_v51 = vpop.xlane.xlu1 %794  ;;  %v787_v52 = vpop.xlane.xlu0 %786 }
 0x3c6   : > { %v797_v53 = vsel %vm796_vm7, %v787_v52, %v795_v51 }
 0x3c7   : > { %799 = vst.msk [vmem:[%s406_s12] sm:$0x7] %vm798_vm8, %v797_v53 }
 0x3c8 PF: > { %p974_p13 = scmp.ge.s32.totalorder %s1072_s20, 2  ;;  %s833_s21 = sand.u32 1, %s1060_s17  }
 0x3c9   : > { %s834_s27 = scalar_lea.sflag [#allocation3], %s833_s21 }
 0x3ca   : > { %p971_p0 = pnand %p974_p13, %p1180_p6 }
 0x3cc   : > { %p972_p5 = pneg %p971_p0 }
 0x3ce   : > { %1055 = dma.done.wait (%p972_p5), %s834_s27, 32  }
 0x3cf   : > { %1057 = vsyncadd (%p972_p5), %s834_s27, 4294967264  ;;  %s1296_s14 = sld [smem:[#allocation5_spill]]  ;;  %p22_p1 = scmp.ge.s32.totalorder %s1163_s23, 5  }
 0x3d0   : > { %s1297_s17 = smov %s1064_s18  ;;  %s1298_s18 = smov %s1068_s19 }
 0x3d1   : > { %s1300_s20 = smov %s1163_s23  ;;  %24 = sbr.rel (!%p22_p1) target bundleno = 6 (0x6), region = 110 }
 0x3d5   : > { %s1299_s19 = smov %s1296_s14 }
 0x3d6   :  { %846 = vsyncpa [#allocation3], 1 }
 0x3d7   :  { %848 = vsyncpa [#allocation3 + $0x1], 1 }

</bundles_post_ra>
